<compile_context>
chip_gen: v7x
topology: tpu7x:2x2x1
jax: 0.10.0
libtpu: 0.0.40
codegen_flags: <defaults>
</compile_context>

<pallas_src>
import math

import jax
import jax.numpy as jnp
import jax.scipy.linalg as jsl
from jax.experimental import pallas as pl
from jax.experimental.pallas import tpu as pltpu

# ---- static configuration (matches the module signature) ----
N_INPUTS = 32     # n_inputs
N_LAYERS = 2      # n_layers (number of Tanh->Linear hidden blocks)
N_UNITS  = 64     # n_units
BATCH    = 16     # small correctness-test batch
STACKED  = 601    # stacked-evaluation batch (exercises grid > 1 + padding)

FOLD     = 2      # batch rows folded into the lane dimension
MAX_TILE = 256    # folded rows per grid step (= 512 original rows)


def _round_up(x, m):
    return (x + m - 1) // m * m


def _make_kernel(n_layers, n_sub, sub_rows):
    """MLP kernel over one (tile_rows, fold*n_inputs) block of folded rows.

    The tile is split into `n_sub` independent sub-tiles whose layer chains
    are emitted in one basic block, so MXU work (matmul) of one sub-tile can
    co-issue with VPU/EUP work (bias-add / tanh) of the other.
    """

    def kernel(x_ref, w1_ref, b1_ref, wh_ref, bh_ref, wo_ref, bo_ref, o_ref):
        wdt = w1_ref.dtype                        # matmul operand dtype (bf16 or f32)
        w1 = w1_ref[...]
        wo = wo_ref[...]
        b1 = b1_ref[...]
        bo = bo_ref[...]
        whs = [wh_ref[i] for i in range(n_layers)]
        bhs = [bh_ref[i] for i in range(n_layers)]

        def mm(a, w):
            # bf16 (or f32) MXU operands, f32 accumulation.
            return jnp.dot(a.astype(wdt), w, preferred_element_type=jnp.float32)

        for s in range(n_sub):                    # static unroll: independent chains
            rows = pl.ds(s * sub_rows, sub_rows)  # static start/size
            h = mm(x_ref[rows, :], w1) + b1
            for i in range(n_layers):
                h = jnp.tanh(h)                   # f32 on VPU/EUP
                h = mm(h, whs[i]) + bhs[i]
            h = jnp.tanh(h)
            o_ref[rows, :] = (mm(h, wo) + bo).astype(o_ref.dtype)

    return kernel


@jax.jit
def odefunc_forward(x, prepared):
    """odefunc forward for a [batch, n_inputs] slab of evaluations.

    `prepared` comes from prepare_params(): lane-folded block-diagonal weights,
    stored in bf16 by default.  Stack as many odefunc evaluations as possible
    along the batch axis per call -- weights stay VMEM-resident across the
    whole grid and the MXU M-dimension fills up.
    """
    w1, b1, wh, bh, wo, bo = prepared
    batch, n_in = x.shape
    n_layers = wh.shape[0]
    f_in = w1.shape[0]                   # fold * n_inputs
    f_out = wo.shape[1]                  # fold * n_inputs
    fold = f_in // n_in

    # Fold `fold` batch rows into the lane dimension (wrapper-side reshape).
    pad_b = (-batch) % fold
    if pad_b:
        x = jnp.pad(x, ((0, pad_b), (0, 0)))
    bf = (batch + pad_b) // fold
    xf = x.reshape(bf, f_in)

    # Row tile: big enough to fill the MXU, small enough to bound VMEM.
    tm = min(MAX_TILE, _round_up(bf, 8))
    pad_r = (-bf) % tm
    if pad_r:
        xf = jnp.pad(xf, ((0, pad_r), (0, 0)))
    bfp = bf + pad_r
    grid = (bfp // tm,)

    n_sub = 2 if (tm >= 16 and tm % 16 == 0) else 1
    kernel = _make_kernel(n_layers, n_sub, tm // n_sub)

    const2 = lambda i: (0, 0)
    const3 = lambda i: (0, 0, 0)
    outf = pl.pallas_call(
        kernel,
        out_shape=jax.ShapeDtypeStruct((bfp, f_out), x.dtype),
        grid=grid,
        in_specs=[
            pl.BlockSpec((tm, f_in), lambda i: (i, 0)),   # x tile: pipelined DMA
            pl.BlockSpec(w1.shape, const2),               # weights/biases: constant
            pl.BlockSpec(b1.shape, const2),               #   index -> VMEM-resident,
            pl.BlockSpec(wh.shape, const3),               #   DMA'd once for the grid
            pl.BlockSpec(bh.shape, const3),
            pl.BlockSpec(wo.shape, const2),
            pl.BlockSpec(bo.shape, const2),
        ],
        out_specs=pl.BlockSpec((tm, f_out), lambda i: (i, 0)),
        compiler_params=pltpu.CompilerParams(
            dimension_semantics=("parallel",)),           # v7x: 2 TCs share the tiles
    )(xf, w1, b1, wh, bh, wo, bo)

    # Unfold lanes back to rows and drop padding.
    return outf[:bf].reshape(bf * fold, n_in)[:batch]


def init_params(key):
    """PyTorch nn.Linear-style init: U(-1/sqrt(fan_in), +1/sqrt(fan_in)).
    Weights stored [in, out] (transposed relative to torch)."""
    ks = jax.random.split(key, 6)

    def uni(k, shape, fan_in):
        bound = 1.0 / math.sqrt(fan_in)
        return jax.random.uniform(k, shape, jnp.float32, -bound, bound)

    w1 = uni(ks[0], (N_INPUTS, N_UNITS), N_INPUTS)
    b1 = uni(ks[1], (1, N_UNITS), N_INPUTS)
    wh = uni(ks[2], (N_LAYERS, N_UNITS, N_UNITS), N_UNITS)
    bh = uni(ks[3], (N_LAYERS, 1, N_UNITS), N_UNITS)
    wo = uni(ks[4], (N_UNITS, N_INPUTS), N_UNITS)
    bo = uni(ks[5], (1, N_INPUTS), N_UNITS)
    return (w1, b1, wh, bh, wo, bo)


def prepare_params(params, compute_dtype=jnp.bfloat16, fold=FOLD):
    """One-time weight prep: lane-fold (block-diagonal) + cast to matmul dtype.

    bf16 is the default on all generations; biases stay f32 (bias-add and tanh
    are done in f32 on the VPU/EUP).
    """
    w1, b1, wh, bh, wo, bo = params

    def bd(w):
        return jsl.block_diag(*([w] * fold)).astype(compute_dtype)

    def rep(b):
        return jnp.concatenate([b] * fold, axis=-1).astype(jnp.float32)

    w1f = bd(w1)
    whf = jnp.stack([bd(wh[i]) for i in range(wh.shape[0])])
    wof = bd(wo)
    return (w1f, rep(b1), whf, rep(bh), wof, rep(bo))


def odefunc_ref(x, params):
    """Pure-JAX reference of the PyTorch forward."""
    w1, b1, wh, bh, wo, bo = params
    h = x @ w1 + b1
    for i in range(wh.shape[0]):
        h = jnp.tanh(h)
        h = h @ wh[i] + bh[i]
    h = jnp.tanh(h)
    return h @ wo + bo


if __name__ == "__main__":
    key = jax.random.PRNGKey(0)
    kx, kp, ks = jax.random.split(key, 3)
    params = init_params(kp)

    # --- small batch, consistent with the module (n_inputs=32, n_units=64) ---
    x = jax.random.normal(kx, (BATCH, N_INPUTS), jnp.float32)
    ref = odefunc_ref(x, params)

    # f32 matmul operands: tight check against the reference.
    prep_f32 = prepare_params(params, compute_dtype=jnp.float32)
    out = jax.block_until_ready(odefunc_forward(x, prep_f32))
    assert out.shape == (BATCH, N_INPUTS)
    assert jnp.allclose(out, ref, atol=1e-4, rtol=1e-4)

    # bf16 weights (default fast path on v5e/v6e/v7x): looser tolerance.
    prep_bf16 = prepare_params(params)
    out_bf16 = jax.block_until_ready(odefunc_forward(x, prep_bf16))
    assert jnp.allclose(out_bf16, ref, atol=5e-2, rtol=5e-2)

    # --- stacked-evaluation path: many odefunc evals per call; exercises the
    #     batch grid (>1 tile), fold/row padding, and megacore semantics. ---
    xs = jax.random.normal(ks, (STACKED, N_INPUTS), jnp.float32)
    refs = odefunc_ref(xs, params)
    outs = jax.block_until_ready(odefunc_forward(xs, prep_bf16))
    assert outs.shape == (STACKED, N_INPUTS)
    assert jnp.allclose(outs, refs, atol=5e-2, rtol=5e-2)

    print("KERNEL_OK")
</pallas_src>

<mosaic_0001>
module attributes {stable_mosaic.version = 11 : i64} {
  func.func @kernel(%arg0: i32, %arg1: memref<8x64xf32, #tpu.memory_space<vmem>>, %arg2: memref<64x128xf32, #tpu.memory_space<vmem>>, %arg3: memref<1x128xf32, #tpu.memory_space<vmem>>, %arg4: memref<2x128x128xf32, #tpu.memory_space<vmem>>, %arg5: memref<2x1x128xf32, #tpu.memory_space<vmem>>, %arg6: memref<128x64xf32, #tpu.memory_space<vmem>>, %arg7: memref<1x64xf32, #tpu.memory_space<vmem>>, %arg8: memref<8x64xf32, #tpu.memory_space<vmem>>) attributes {dimension_semantics = [#tpu.dimension_semantics<parallel>], iteration_bounds = array<i64: 1>, scalar_prefetch = 0 : i64, scratch_operands = 0 : i64, tpu.core_type = #tpu.core_type<tc>, window_params = [{transform_indices = @transform_0, window_bounds = array<i64: 8, 64>}, {pipeline_mode = #tpu.pipeline_mode<synchronous>, transform_indices = @transform_1, window_bounds = array<i64: 64, 128>}, {pipeline_mode = #tpu.pipeline_mode<synchronous>, transform_indices = @transform_2, window_bounds = array<i64: 1, 128>}, {pipeline_mode = #tpu.pipeline_mode<synchronous>, transform_indices = @transform_3, window_bounds = array<i64: 2, 128, 128>}, {pipeline_mode = #tpu.pipeline_mode<synchronous>, transform_indices = @transform_4, window_bounds = array<i64: 2, 1, 128>}, {pipeline_mode = #tpu.pipeline_mode<synchronous>, transform_indices = @transform_5, window_bounds = array<i64: 128, 64>}, {pipeline_mode = #tpu.pipeline_mode<synchronous>, transform_indices = @transform_6, window_bounds = array<i64: 1, 64>}, {transform_indices = @transform_7, window_bounds = array<i64: 8, 64>}]} {
    %c0 = arith.constant 0 : index
    %c0_0 = arith.constant 0 : index
    %0 = vector.load %arg2[%c0, %c0_0] : memref<64x128xf32, #tpu.memory_space<vmem>>, vector<64x128xf32>
    %c0_1 = arith.constant 0 : index
    %c0_2 = arith.constant 0 : index
    %1 = vector.load %arg6[%c0_1, %c0_2] : memref<128x64xf32, #tpu.memory_space<vmem>>, vector<128x64xf32>
    %c0_3 = arith.constant 0 : index
    %c0_4 = arith.constant 0 : index
    %2 = vector.load %arg3[%c0_3, %c0_4] : memref<1x128xf32, #tpu.memory_space<vmem>>, vector<1x128xf32>
    %c0_5 = arith.constant 0 : index
    %c0_6 = arith.constant 0 : index
    %3 = vector.load %arg7[%c0_5, %c0_6] : memref<1x64xf32, #tpu.memory_space<vmem>>, vector<1x64xf32>
    %c0_7 = arith.constant 0 : index
    %c0_8 = arith.constant 0 : index
    %c0_9 = arith.constant 0 : index
    %4 = vector.load %arg4[%c0_7, %c0_8, %c0_9] : memref<2x128x128xf32, #tpu.memory_space<vmem>>, vector<1x128x128xf32>
    %5 = vector.shape_cast %4 : vector<1x128x128xf32> to vector<128x128xf32>
    %c1 = arith.constant 1 : index
    %c0_10 = arith.constant 0 : index
    %c0_11 = arith.constant 0 : index
    %6 = vector.load %arg4[%c1, %c0_10, %c0_11] : memref<2x128x128xf32, #tpu.memory_space<vmem>>, vector<1x128x128xf32>
    %7 = vector.shape_cast %6 : vector<1x128x128xf32> to vector<128x128xf32>
    %c0_12 = arith.constant 0 : index
    %c0_13 = arith.constant 0 : index
    %c0_14 = arith.constant 0 : index
    %8 = vector.load %arg5[%c0_12, %c0_13, %c0_14] : memref<2x1x128xf32, #tpu.memory_space<vmem>>, vector<1x1x128xf32>
    %9 = vector.shape_cast %8 : vector<1x1x128xf32> to vector<1x128xf32>
    %c1_15 = arith.constant 1 : index
    %c0_16 = arith.constant 0 : index
    %c0_17 = arith.constant 0 : index
    %10 = vector.load %arg5[%c1_15, %c0_16, %c0_17] : memref<2x1x128xf32, #tpu.memory_space<vmem>>, vector<1x1x128xf32>
    %11 = vector.shape_cast %10 : vector<1x1x128xf32> to vector<1x128xf32>
    %c0_18 = arith.constant 0 : index
    %c0_19 = arith.constant 0 : index
    %12 = vector.load %arg1[%c0_18, %c0_19] : memref<8x64xf32, #tpu.memory_space<vmem>>, vector<8x64xf32>
    %cst = arith.constant dense<0.000000e+00> : vector<8x128xf32>
    %13 = tpu.matmul %12, %0, %cst {dimension_numbers = #tpu.dot_dimension_numbers<[1], [0], [0], [1], [0, 0, 1, 1], [], []>} : vector<8x64xf32>, vector<64x128xf32>, vector<8x128xf32> -> vector<8x128xf32>
    %14 = vector.broadcast %2 : vector<1x128xf32> to vector<8x128xf32>
    %15 = arith.addf %13, %14 : vector<8x128xf32>
    %16 = math.tanh %15 : vector<8x128xf32>
    %cst_20 = arith.constant dense<0.000000e+00> : vector<8x128xf32>
    %17 = tpu.matmul %16, %5, %cst_20 {dimension_numbers = #tpu.dot_dimension_numbers<[1], [0], [0], [1], [0, 0, 1, 1], [], []>} : vector<8x128xf32>, vector<128x128xf32>, vector<8x128xf32> -> vector<8x128xf32>
    %18 = vector.broadcast %9 : vector<1x128xf32> to vector<8x128xf32>
    %19 = arith.addf %17, %18 : vector<8x128xf32>
    %20 = math.tanh %19 : vector<8x128xf32>
    %cst_21 = arith.constant dense<0.000000e+00> : vector<8x128xf32>
    %21 = tpu.matmul %20, %7, %cst_21 {dimension_numbers = #tpu.dot_dimension_numbers<[1], [0], [0], [1], [0, 0, 1, 1], [], []>} : vector<8x128xf32>, vector<128x128xf32>, vector<8x128xf32> -> vector<8x128xf32>
    %22 = vector.broadcast %11 : vector<1x128xf32> to vector<8x128xf32>
    %23 = arith.addf %21, %22 : vector<8x128xf32>
    %24 = math.tanh %23 : vector<8x128xf32>
    %cst_22 = arith.constant dense<0.000000e+00> : vector<8x64xf32>
    %25 = tpu.matmul %24, %1, %cst_22 {dimension_numbers = #tpu.dot_dimension_numbers<[1], [0], [0], [1], [0, 0, 1, 1], [], []>} : vector<8x128xf32>, vector<128x64xf32>, vector<8x64xf32> -> vector<8x64xf32>
    %26 = vector.broadcast %3 : vector<1x64xf32> to vector<8x64xf32>
    %27 = arith.addf %25, %26 : vector<8x64xf32>
    %c0_23 = arith.constant 0 : index
    %c0_24 = arith.constant 0 : index
    %28 = vector.load %arg8[%c0_23, %c0_24] : memref<8x64xf32, #tpu.memory_space<vmem>>, vector<8x64xf32>
    tpu.vector_store %arg8[%c0_23, %c0_24], %27 {strides = array<i32>} : memref<8x64xf32, #tpu.memory_space<vmem>>, vector<8x64xf32>,
    return
  }
  func.func @transform_0(%arg0: i32) -> (i32, i32) {
    %c0_i32 = arith.constant 0 : i32
    %c0_i32_0 = arith.constant 0 : i32
    return %arg0, %c0_i32 : i32, i32
  }
  func.func @transform_1(%arg0: i32) -> (i32, i32) {
    %c0_i32 = arith.constant 0 : i32
    %c0_i32_0 = arith.constant 0 : i32
    %c0_i32_1 = arith.constant 0 : i32
    return %c0_i32, %c0_i32_0 : i32, i32
  }
  func.func @transform_2(%arg0: i32) -> (i32, i32) {
    %c0_i32 = arith.constant 0 : i32
    %c0_i32_0 = arith.constant 0 : i32
    %c0_i32_1 = arith.constant 0 : i32
    return %c0_i32, %c0_i32_0 : i32, i32
  }
  func.func @transform_3(%arg0: i32) -> (i32, i32, i32) {
    %c0_i32 = arith.constant 0 : i32
    %c0_i32_0 = arith.constant 0 : i32
    %c0_i32_1 = arith.constant 0 : i32
    %c0_i32_2 = arith.constant 0 : i32
    return %c0_i32, %c0_i32_0, %c0_i32_1 : i32, i32, i32
  }
  func.func @transform_4(%arg0: i32) -> (i32, i32, i32) {
    %c0_i32 = arith.constant 0 : i32
    %c0_i32_0 = arith.constant 0 : i32
    %c0_i32_1 = arith.constant 0 : i32
    %c0_i32_2 = arith.constant 0 : i32
    return %c0_i32, %c0_i32_0, %c0_i32_1 : i32, i32, i32
  }
  func.func @transform_5(%arg0: i32) -> (i32, i32) {
    %c0_i32 = arith.constant 0 : i32
    %c0_i32_0 = arith.constant 0 : i32
    %c0_i32_1 = arith.constant 0 : i32
    return %c0_i32, %c0_i32_0 : i32, i32
  }
  func.func @transform_6(%arg0: i32) -> (i32, i32) {
    %c0_i32 = arith.constant 0 : i32
    %c0_i32_0 = arith.constant 0 : i32
    %c0_i32_1 = arith.constant 0 : i32
    return %c0_i32, %c0_i32_0 : i32, i32
  }
  func.func @transform_7(%arg0: i32) -> (i32, i32) {
    %c0_i32 = arith.constant 0 : i32
    %c0_i32_0 = arith.constant 0 : i32
    return %arg0, %c0_i32 : i32, i32
  }
}

</mosaic_0001>

<bundles_post_ra>
// kernel: odefunc_forward.1
= control target key start
LH: loop header
LB: loop body
LE: loop exit
PB: predicated region body
PF: predicated region fallthrough
CT: control target
= control target key end

     0   :  { %12 = vsyncpa [#allocation3], 0  ;;  %s730_s24 = smov [#allocation2]   ;;  %s916_s0 = inlined_call_operand.vmem [shape: f32[8,64], index: 0, kind: input, shape index: {}]   ;;  %s917_s1 = inlined_call_operand.vmem [shape: f32[64,128], index: 1, kind: input, shape index: {}]   ;;  %s918_s2 = inlined_call_operand.vmem [shape: f32[1,128], index: 2, kind: input, shape index: {}]   ;;  %s919_s3 = inlined_call_operand.hbm [shape: f32[2,128,128], index: 3, kind: input, shape index: {}]   ;;  %s920_s4 = inlined_call_operand.vmem [shape: f32[2,1,128], index: 4, kind: input, shape index: {}]   ;;  %s921_s5 = inlined_call_operand.vmem [shape: f32[128,64], index: 5, kind: input, shape index: {}]   ;;  %s922_s6 = inlined_call_operand.vmem [shape: f32[1,64], index: 6, kind: input, shape index: {}]   ;;  %s923_s7 = inlined_call_operand.vmem [shape: f32[8,64], index: 7, kind: output, shape index: {}]  }
   0x1   :  { %s24_s25 = sshll.u32 %s730_s24, 4  ;;  %s706_s28 = scalar_lea.hbm %s919_s3, 4096  ;;  %s25_s25 = int_to_ptr.vmem [resolvable:$true] %s24_s25 }
   0x2   :  { %p707_p0 = scmp.ne.s32.totalorder %s919_s3, %s706_s28  ;;  %p710_p1 = scmp.lt.u32.totalorder %s706_s28, %s919_s3 }
   0x4   :  { %p712_p2 = pnand %p710_p1, %p707_p0 }
   0x6   :  { %715 = shalt.err (!%p712_p2)
}
   0x7   :  { %s716_s10 = scalar_lea.vmem %s25_s25, 4096  ;;  %p721_p4 = scmp.lt.s32.totalorder %s25_s25, %s25_s25 }
   0x8   :  { %p717_p3 = scmp.ne.s32.totalorder %s25_s25, %s716_s10  ;;  %p722_p5 = scmp.lt.s32.totalorder %s716_s10, %s716_s10 }
   0xa   :  { %p723_p6 = por %p722_p5, %p721_p4 }
   0xc   :  { %p724_p7 = pnand %p723_p6, %p717_p3 }
   0xe   :  { %727 = shalt.err (!%p724_p7)
}
   0xf   :  { %s731_s11 = smov 128   ;;  %s732_s12 = smov 8  }
  0x10   :  { %30 = dma.hbm_to_vmem [thread:$0]  %s919_s3, 4096, %s25_s25, [#allocation3], %s731_s11, %s731_s11, %s732_s12  }
  0x11   :  { %728 = dma.done.wait [#allocation3], 4096  }
  0x12   :  { %729 = vsyncadd [#allocation3], 4294963200  ;;  %v733_v0 = vmov 0.0|0.0   ;;  %vm734_vm0 = vmmov 0   ;;  %v735_v1 = vmov 0.0   ;;  %v40_v2 = vld [vmem:[%s917_s1] sm:$0xff] }
  0x13   :  { %610 = vmatprep.subr.bf16.mxu0 %v733_v0  ;;  %502 = vmatprep.mubr.msk.f32.mxu0 %vm734_vm0, %v735_v1  ;;  %v41_v3 = vld [vmem:[%s917_s1 + $0x8] sm:$0xff]  ;;  %v42_v4 = vld [vmem:[%s917_s1 + $0x10] sm:$0xff]  ;;  %v43_v6 = vld [vmem:[%s917_s1 + $0x18] sm:$0xff]  ;;  %vm109_vm1 = vcmask 523264  }
  0x14   :  { %622 = vmatprep.subr.bf16.mxu1 %v733_v0  ;;  %537 = vmatprep.mubr.msk.f32.mxu1 %vm734_vm0, %v735_v1  ;;  %v611_v5 = vpack.c.bf16 %v41_v3, %v40_v2  ;;  %v614_v7 = vpack.c.bf16 %v43_v6, %v42_v4  ;;  %v66_v8 = vld [vmem:[#allocation2] sm:$0xff]  ;;  %v67_v9 = vld [vmem:[#allocation2 + $0x8] sm:$0xff]  ;;  %v68_v10 = vld [vmem:[#allocation2 + $0x10] sm:$0xff] }
  0x15   :  { %v44_v11 = vld [vmem:[%s917_s1 + $0x20] sm:$0xff]  ;;  %v45_v12 = vld [vmem:[%s917_s1 + $0x28] sm:$0xff]  ;;  %v623_v13 = vpack.c.bf16 %v67_v9, %v66_v8  ;;  %v69_v14 = vld [vmem:[#allocation2 + $0x18] sm:$0xff] }
  0x16   :  { %612 = vmatpush3.bf16.msra.mxu0 %v611_v5  ;;  %v626_v15 = vpack.c.bf16 %v69_v14, %v68_v10  ;;  %v617_v16 = vpack.c.bf16 %v45_v12, %v44_v11  ;;  %v70_v17 = vld [vmem:[#allocation2 + $0x20] sm:$0xff]  ;;  %v71_v18 = vld [vmem:[#allocation2 + $0x28] sm:$0xff]  ;;  %v46_v19 = vld [vmem:[%s917_s1 + $0x30] sm:$0xff] }
  0x17   :  { %613 = vmatprep.subr.bf16.mxu0 %v733_v0  ;;  %624 = vmatpush3.bf16.msra.mxu1 %v623_v13  ;;  %v47_v20 = vld [vmem:[%s917_s1 + $0x38] sm:$0xff]  ;;  %v629_v21 = vpack.c.bf16 %v71_v18, %v70_v17  ;;  %v72_v23 = vld [vmem:[#allocation2 + $0x30] sm:$0xff]  ;;  %v102_v26 = vld [vmem:[%s916_s0] sm:$0xff] }
  0x18   :  { %625 = vmatprep.subr.bf16.mxu1 %v733_v0  ;;  %v620_v22 = vpack.c.bf16 %v47_v20, %v46_v19  ;;  %v73_v24 = vld [vmem:[#allocation2 + $0x38] sm:$0xff]  ;;  %v74_v27 = vld [vmem:[#allocation2 + $0x40] sm:$0xff]  ;;  %v75_v28 = vld [vmem:[#allocation2 + $0x48] sm:$0xff] }
  0x19   :  { %v632_v25 = vpack.c.bf16 %v73_v24, %v72_v23  ;;  %v635_v29 = vpack.c.bf16 %v75_v28, %v74_v27  ;;  %v76_v30 = vld [vmem:[#allocation2 + $0x50] sm:$0xff]  ;;  %v77_v31 = vld [vmem:[#allocation2 + $0x58] sm:$0xff]  ;;  %v78_v33 = vld [vmem:[#allocation2 + $0x60] sm:$0xff] }
  0x1a   :  { %615 = vmatpush3.bf16.msra.mxu0 %v614_v7  ;;  %v638_v32 = vpack.c.bf16 %v77_v31, %v76_v30  ;;  %v79_v34 = vld [vmem:[#allocation2 + $0x68] sm:$0xff]  ;;  %v80_v36 = vld [vmem:[#allocation2 + $0x70] sm:$0xff]  ;;  %v81_v37 = vld [vmem:[#allocation2 + $0x78] sm:$0xff] }
  0x1b   :  { %616 = vmatprep.subr.bf16.mxu0 %v733_v0  ;;  %627 = vmatpush3.bf16.msra.mxu1 %v626_v15  ;;  %v641_v35 = vpack.c.bf16 %v79_v34, %v78_v33  ;;  %v644_v38 = vpack.c.bf16 %v81_v37, %v80_v36  ;;  %v83_v39 = vld [vmem:[#allocation2 + $0x80] sm:$0xff]  ;;  %v84_v40 = vld [vmem:[#allocation2 + $0x88] sm:$0xff]  ;;  %v85_v41 = vld [vmem:[#allocation2 + $0x90] sm:$0xff] }
  0x1c   :  { %628 = vmatprep.subr.bf16.mxu1 %v733_v0  ;;  %v647_v42 = vpack.c.bf16 %v84_v40, %v83_v39  ;;  %v86_v43 = vld [vmem:[#allocation2 + $0x98] sm:$0xff]  ;;  %v87_v45 = vld [vmem:[#allocation2 + $0xa0] sm:$0xff]  ;;  %v88_v46 = vld [vmem:[#allocation2 + $0xa8] sm:$0xff] }
  0x1d   :  { %v650_v44 = vpack.c.bf16 %v86_v43, %v85_v41  ;;  %v653_v47 = vpack.c.bf16 %v88_v46, %v87_v45  ;;  %v89_v48 = vld [vmem:[#allocation2 + $0xb0] sm:$0xff]  ;;  %v90_v49 = vld [vmem:[#allocation2 + $0xb8] sm:$0xff]  ;;  %v91_v51 = vld [vmem:[#allocation2 + $0xc0] sm:$0xff] }
  0x1e   :  { %618 = vmatpush3.bf16.msra.mxu0 %v617_v16  ;;  %v656_v50 = vpack.c.bf16 %v90_v49, %v89_v48  ;;  %v92_v52 = vld [vmem:[#allocation2 + $0xc8] sm:$0xff]  ;;  %v421_v54 = vld [vmem:[%s918_s2] ss:$0 sm:$0xff]  ;;  %v93_v59 = vld [vmem:[#allocation2 + $0xd0] sm:$0xff] }
  0x1f   :  { %619 = vmatprep.subr.bf16.mxu0 %v733_v0  ;;  %630 = vmatpush3.bf16.msra.mxu1 %v629_v21  ;;  %v659_v53 = vpack.c.bf16 %v92_v52, %v91_v51  ;;  %v94_v60 = vld [vmem:[#allocation2 + $0xd8] sm:$0xff]  ;;  %v95_v62 = vld [vmem:[#allocation2 + $0xe0] sm:$0xff]  ;;  %v96_v63 = vld [vmem:[#allocation2 + $0xe8] sm:$0xff] }
  0x20   :  { %631 = vmatprep.subr.bf16.mxu1 %v733_v0  ;;  %v662_v61 = vpack.c.bf16 %v94_v60, %v93_v59  ;;  %v665_v2 = vpack.c.bf16 %v96_v63, %v95_v62  ;;  %v97_v3 = vld [vmem:[#allocation2 + $0xf0] sm:$0xff]  ;;  %v98_v4 = vld [vmem:[#allocation2 + $0xf8] sm:$0xff]  ;;  %v49_v6 = vld [vmem:[%s921_s5 + $0x8] sm:$0xff] }
  0x21   :  { %v668_v5 = vpack.c.bf16 %v98_v4, %v97_v3  ;;  %v50_v7 = vld [vmem:[%s921_s5 + $0x10] sm:$0xff]  ;;  %v51_v9 = vld [vmem:[%s921_s5 + $0x18] sm:$0xff]  ;;  %v52_v11 = vld [vmem:[%s921_s5 + $0x20] sm:$0xff] }
  0x22   :  { %621 = vmatpush3.bf16.msra.mxu0 %v620_v22  ;;  %v674_v10 = vpack.c.bf16 %v51_v9, %v50_v7  ;;  %v53_v12 = vld [vmem:[%s921_s5 + $0x28] sm:$0xff]  ;;  %v54_v14 = vld [vmem:[%s921_s5 + $0x30] sm:$0xff]  ;;  %v55_v15 = vld [vmem:[%s921_s5 + $0x38] sm:$0xff] }
  0x23   :  { %646 = vmatprep.subr.bf16.mxu0 %v733_v0  ;;  %633 = vmatpush3.bf16.msra.mxu1 %v632_v25  ;;  %v677_v13 = vpack.c.bf16 %v53_v12, %v52_v11  ;;  %v680_v16 = vpack.c.bf16 %v55_v15, %v54_v14  ;;  %v56_v17 = vld [vmem:[%s921_s5 + $0x40] sm:$0xff]  ;;  %v57_v18 = vld [vmem:[%s921_s5 + $0x48] sm:$0xff]  ;;  %v58_v25 = vld [vmem:[%s921_s5 + $0x50] sm:$0xff] }
  0x24   :  { %634 = vmatprep.subr.bf16.mxu1 %v733_v0  ;;  %v683_v19 = vpack.c.bf16 %v57_v18, %v56_v17  ;;  %v423_v20 = vld [vmem:[%s920_s4] ss:$0 sm:$0xff]  ;;  %v62_v31 = vld [vmem:[%s921_s5 + $0x70] sm:$0xff]  ;;  %v424_v34 = vld [vmem:[%s920_s4 + $0x1] ss:$0 sm:$0xff] }
  0x25   :  { %503 = vmatmul.mubr.msk.f32.vlgmr.msra.gmra.mrb[0].mxu0 %vm109_vm1, %v102_v26  ;;  %v59_v26 = vld [vmem:[%s921_s5 + $0x58] sm:$0xff]  ;;  %v60_v28 = vld [vmem:[%s921_s5 + $0x60] sm:$0xff] }
  0x26   :  { %572 = vmatprep.mubr.msk.f32.mxu0 %vm734_vm0, %v735_v1  ;;  %648 = vmatpush3.bf16.msra.mxu0 %v647_v42  ;;  %v686_v27 = vpack.c.bf16 %v59_v26, %v58_v25  ;;  %v425_v39 = vld [vmem:[%s922_s6] ss:$0 sm:$0xff] }
  0x27   :  { %636 = vmatpush3.bf16.msra.mxu1 %v635_v29  ;;  %649 = vmatprep.subr.bf16.mxu0 %v733_v0  ;;  %v61_v29 = vld [vmem:[%s921_s5 + $0x68] sm:$0xff] }
  0x28   :  { %637 = vmatprep.subr.bf16.mxu1 %v733_v0  ;;  %v689_v30 = vpack.c.bf16 %v61_v29, %v60_v28 }
  0x2a   :  { %651 = vmatpush3.bf16.msra.mxu0 %v650_v44 }
  0x2b   :  { %639 = vmatpush3.bf16.msra.mxu1 %v638_v32  ;;  %652 = vmatprep.subr.bf16.mxu0 %v733_v0  ;;  %v63_v32 = vld [vmem:[%s921_s5 + $0x78] sm:$0xff] }
  0x2c   :  { %640 = vmatprep.subr.bf16.mxu1 %v733_v0  ;;  %v692_v33 = vpack.c.bf16 %v63_v32, %v62_v31 }
  0x2e   :  { %654 = vmatpush3.bf16.msra.mxu0 %v653_v47 }
  0x2f   :  { %642 = vmatpush3.bf16.msra.mxu1 %v641_v35  ;;  %655 = vmatprep.subr.bf16.mxu0 %v733_v0 }
  0x30   :  { %643 = vmatprep.subr.bf16.mxu1 %v733_v0 }
  0x32   :  { %657 = vmatpush3.bf16.msra.mxu0 %v656_v50 }
  0x33   :  { %645 = vmatpush3.bf16.msra.mxu1 %v644_v38  ;;  %658 = vmatprep.subr.bf16.mxu0 %v733_v0 }
  0x34   :  { %670 = vmatprep.subr.bf16.mxu1 %v733_v0 }
  0x36   :  { %660 = vmatpush3.bf16.msra.mxu0 %v659_v53 }
  0x37   :  { %661 = vmatprep.subr.bf16.mxu0 %v733_v0 }
  0x3a   :  { %663 = vmatpush3.bf16.msra.mxu0 %v662_v61 }
  0x3b   :  { %664 = vmatprep.subr.bf16.mxu0 %v733_v0 }
  0x3e   :  { %666 = vmatpush3.bf16.msra.mxu0 %v665_v2 }
  0x3f   :  { %667 = vmatprep.subr.bf16.mxu0 %v733_v0 }
  0x42   :  { %669 = vmatpush3.bf16.msra.mxu0 %v668_v5 }
  0xf8   :  { %v179_v55 = vpop.f32.mrb[0].mxu0 }
  0xf9   :  { %v180_v56 = vadd.f32 %v421_v54, %v179_v55  ;;  %v504_v57 = vpop.f32.mrb[1].mxu0 }
  0xfb   :  { %700 = vtanh.f32 %v180_v56 }
 0x105   :  { %v701_v58 = vpop.eup %700 }
 0x106   :  { %538 = vmatmul.mubr.f32.vlgmr.msra.gmra.mrb[0].mxu1 %v701_v58 }
 0x107   :  { %607 = vmatprep.mubr.msk.f32.mxu1 %vm734_vm0, %v735_v1  ;;  %v48_v1 = vld [vmem:[%s921_s5] sm:$0xff] }
 0x108   :  { %v671_v8 = vpack.c.bf16 %v49_v6, %v48_v1 }
 0x10a   :  { %672 = vmatpush3.bf16.msra.mxu1 %v671_v8 }
 0x10b   :  { %673 = vmatprep.subr.bf16.mxu1 %v733_v0 }
 0x10e   :  { %675 = vmatpush3.bf16.msra.mxu1 %v674_v10 }
 0x10f   :  { %676 = vmatprep.subr.bf16.mxu1 %v733_v0 }
 0x112   :  { %678 = vmatpush3.bf16.msra.mxu1 %v677_v13 }
 0x113   :  { %679 = vmatprep.subr.bf16.mxu1 %v733_v0 }
 0x116   :  { %681 = vmatpush3.bf16.msra.mxu1 %v680_v16 }
 0x117   :  { %682 = vmatprep.subr.bf16.mxu1 %v733_v0 }
 0x11a   :  { %684 = vmatpush3.bf16.msra.mxu1 %v683_v19 }
 0x11b   :  { %685 = vmatprep.subr.bf16.mxu1 %v733_v0 }
 0x11e   :  { %687 = vmatpush3.bf16.msra.mxu1 %v686_v27 }
 0x11f   :  { %688 = vmatprep.subr.bf16.mxu1 %v733_v0 }
 0x122   :  { %690 = vmatpush3.bf16.msra.mxu1 %v689_v30 }
 0x123   :  { %691 = vmatprep.subr.bf16.mxu1 %v733_v0 }
 0x126   :  { %693 = vmatpush3.bf16.msra.mxu1 %v692_v33 }
 0x1d9   :  { %v256_v21 = vpop.f32.mrb[0].mxu1 }
 0x1da   :  { %v257_v22 = vadd.f32 %v423_v20, %v256_v21  ;;  %v539_v23 = vpop.f32.mrb[1].mxu1 }
 0x1dc   :  { %702 = vtanh.f32 %v257_v22 }
 0x1e6   :  { %v703_v24 = vpop.eup %702 }
 0x1e7   :  { %573 = vmatmul.mubr.f32.vlgmr.msra.gmra.mrb[2].mxu0 %v703_v24 }
 0x2ba   :  { %v333_v35 = vpop.f32.mrb[2].mxu0 }
 0x2bb   :  { %v334_v36 = vadd.f32 %v424_v34, %v333_v35  ;;  %v574_v37 = vpop.f32.mrb[3].mxu0 }
 0x2bd   :  { %704 = vtanh.f32 %v334_v36 }
 0x2c7   :  { %v705_v38 = vpop.eup %704 }
 0x2c8   :  { %608 = vmatmul.mubr.f32.vlgmr.msra.gmra.mrb[2].mxu1 %v705_v38 }
 0x39b   :  { %v410_v40 = vpop.f32.mrb[2].mxu1 }
 0x39c   :  { %v411_v41 = vadd.f32 %v425_v39, %v410_v40  ;;  %v609_v42 = vpop.f32.mrb[3].mxu1 }
 0x39e   :  { %414 = vst.msk [vmem:[%s923_s7] sm:$0xff] %vm109_vm1, %v411_v41 }
 0x39f   :  { %419 = vsyncpa [#allocation3], 1 }

</bundles_post_ra>
